<compile_context>
chip_gen: v7x
topology: tpu7x:2x2x1
jax: 0.10.0
libtpu: 0.0.40
codegen_flags: <defaults>
</compile_context>

<pallas_src>
import functools

import jax
import jax.numpy as jnp
from jax.experimental import pallas as pl
from jax.experimental.pallas import tpu as pltpu


_INV_SQRT2 = 0.7071067811865476  # hoisted 1/sqrt(2)


def _ffn_kernel(x_ref, w1_ref, b1_ref, w2_ref, b2_ref, o_ref, acc_ref):
    # x_ref:  (tm, dim)        token tile (native dtype)
    # w1_ref: (dim, th)        fc1 weight tile ([in, out] layout)
    # b1_ref: (1, th)          fc1 bias tile
    # w2_ref: (th, out_dim)    fc2 weight tile
    # b2_ref: (1, out_dim)     fc2 bias
    # o_ref:  (tm, out_dim)    output tile (resident across the hidden axis)
    # acc_ref:(tm, out_dim)    f32 accumulator scratch
    j = pl.program_id(1)

    @pl.when(j == 0)
    def _():
        acc_ref[...] = jnp.zeros_like(acc_ref)

    # fc1 partial: native-dtype operands straight to the MXU, f32 accumulation.
    h = jnp.dot(x_ref[...], w1_ref[...], preferred_element_type=jnp.float32)
    h = h + b1_ref[...].astype(jnp.float32)

    # Exact (erf) GELU in f32 — matches nn.GELU() default semantics.
    h = 0.5 * h * (1.0 + jax.lax.erf(h * _INV_SQRT2))

    # dropout: identity in inference mode.

    # fc2 partial accumulation over hidden tiles (cast back to weight dtype so
    # bf16 weights use the fast bf16 MXU path; f32 weights stay f32).
    acc_ref[...] += jnp.dot(h.astype(w2_ref.dtype), w2_ref[...],
                            preferred_element_type=jnp.float32)

    @pl.when(j == pl.num_programs(1) - 1)
    def _():
        o_ref[...] = (acc_ref[...] + b2_ref[...].astype(jnp.float32)).astype(o_ref.dtype)


def _round_up(x, m):
    return ((x + m - 1) // m) * m


@functools.partial(jax.jit, static_argnames=("tm", "th"))
def feed_forward(x, w1, b1, w2, b2, *, tm=256, th=512):
    """x: [B, S, dim]; w1: [dim, hidden]; b1: [hidden]; w2: [hidden, out]; b2: [out]."""
    B, S, dim = x.shape
    hidden = w1.shape[1]
    out_dim = w2.shape[1]
    M = B * S

    # Token tile: MXU-friendly, multiple of 16 (bf16 sublane packing), clamped
    # so tiny problems collapse to a single grid step instead of asserting.
    tm_eff = min(tm, _round_up(M, 16))
    tm_eff = _round_up(tm_eff, 16)
    M_pad = _round_up(M, tm_eff)

    # Hidden tile: lane-aligned reduction tile; fall back to full hidden if it
    # does not divide evenly (keeps BlockSpec divisibility rules satisfied).
    th_eff = th if (hidden % th == 0) else hidden

    x2 = x.reshape(M, dim)
    if M_pad != M:
        x2 = jnp.pad(x2, ((0, M_pad - M), (0, 0)))

    b1_2 = b1.reshape(1, hidden)
    b2_2 = b2.reshape(1, out_dim)

    grid = (M_pad // tm_eff, hidden // th_eff)

    # Explicit VMEM budget (double-buffered tiles + f32 accumulator + f32
    # intermediate), capped at 64 MiB so it is valid on v7x as well.
    isz = lambda a: jnp.dtype(a.dtype).itemsize
    est = 2 * (tm_eff * dim * isz(x2)
               + dim * th_eff * isz(w1)
               + th_eff * isz(b1)
               + th_eff * out_dim * isz(w2)
               + out_dim * isz(b2)
               + tm_eff * out_dim * isz(x2))
    est += tm_eff * out_dim * 4          # acc scratch
    est += 2 * tm_eff * th_eff * 4       # f32 intermediate h
    vmem_limit = int(min(max(2 * est, 32 * 1024 * 1024), 64 * 1024 * 1024))

    out = pl.pallas_call(
        _ffn_kernel,
        out_shape=jax.ShapeDtypeStruct((M_pad, out_dim), x.dtype),
        grid_spec=pltpu.PrefetchScalarGridSpec(
            num_scalar_prefetch=0,
            grid=grid,
            in_specs=[
                pl.BlockSpec((tm_eff, dim), lambda i, j: (i, 0)),
                pl.BlockSpec((dim, th_eff), lambda i, j: (0, j)),
                pl.BlockSpec((1, th_eff), lambda i, j: (0, j)),
                pl.BlockSpec((th_eff, out_dim), lambda i, j: (j, 0)),
                pl.BlockSpec((1, out_dim), lambda i, j: (0, 0)),
            ],
            out_specs=pl.BlockSpec((tm_eff, out_dim), lambda i, j: (i, 0)),
            scratch_shapes=[pltpu.VMEM((tm_eff, out_dim), jnp.float32)],
        ),
        compiler_params=pltpu.CompilerParams(
            dimension_semantics=("parallel", "arbitrary"),
            vmem_limit_bytes=vmem_limit,
        ),
    )(x2, w1, b1_2, w2, b2_2)

    if M_pad != M:
        out = out[:M]
    return out.reshape(B, S, out_dim)


def _reference(x, w1, b1, w2, b2):
    h = jnp.einsum("bsd,dh->bsh", x, w1) + b1
    h = 0.5 * h * (1.0 + jax.lax.erf(h * _INV_SQRT2))
    y = jnp.einsum("bsh,ho->bso", h, w2) + b2
    return y


if __name__ == "__main__":
    # Module config: dim=128, hidden_dim=256, dropout=0.0 (inference), out_dim=dim.
    # Feature dims are lane-dense (multiples of 128) per the perf review.
    B, S, dim, hidden = 2, 8, 128, 256
    out_dim = dim

    key = jax.random.PRNGKey(0)
    k_x, k_w1, k_b1, k_w2, k_b2 = jax.random.split(key, 5)

    x = jax.random.normal(k_x, (B, S, dim), dtype=jnp.float32)

    # PyTorch Linear stores weight as [out, in]; we keep [in, out] for the kernel.
    bound1 = 1.0 / jnp.sqrt(dim)
    w1 = jax.random.uniform(k_w1, (dim, hidden), jnp.float32, -bound1, bound1)
    b1 = jax.random.uniform(k_b1, (hidden,), jnp.float32, -bound1, bound1)
    bound2 = 1.0 / jnp.sqrt(hidden)
    w2 = jax.random.uniform(k_w2, (hidden, out_dim), jnp.float32, -bound2, bound2)
    b2 = jax.random.uniform(k_b2, (out_dim,), jnp.float32, -bound2, bound2)

    # f32 path (tight tolerance vs reference).
    y = feed_forward(x, w1, b1, w2, b2)
    y = jax.block_until_ready(y)
    y_ref = _reference(x, w1, b1, w2, b2)
    assert y.shape == (B, S, out_dim)
    assert jnp.allclose(y, y_ref, atol=1e-4, rtol=1e-4), "f32 mismatch vs reference"

    # bf16 path (native bf16 MXU operands, relaxed tolerance).
    xb, w1b, b1b, w2b, b2b = (a.astype(jnp.bfloat16) for a in (x, w1, b1, w2, b2))
    yb = feed_forward(xb, w1b, b1b, w2b, b2b)
    yb = jax.block_until_ready(yb)
    assert yb.shape == (B, S, out_dim)
    assert jnp.allclose(yb.astype(jnp.float32), y_ref, atol=5e-2, rtol=5e-2), \
        "bf16 mismatch vs reference"

    print("KERNEL_OK")
</pallas_src>

<mosaic_0001>
module attributes {stable_mosaic.version = 11 : i64} {
  func.func @_ffn_kernel(%arg0: i32, %arg1: i32, %arg2: memref<16x128xf32, #tpu.memory_space<vmem>>, %arg3: memref<128x256xf32, #tpu.memory_space<vmem>>, %arg4: memref<1x256xf32, #tpu.memory_space<vmem>>, %arg5: memref<256x128xf32, #tpu.memory_space<vmem>>, %arg6: memref<1x128xf32, #tpu.memory_space<vmem>>, %arg7: memref<16x128xf32, #tpu.memory_space<vmem>>, %arg8: memref<16x128xf32, #tpu.memory_space<vmem>>) attributes {dimension_semantics = [#tpu.dimension_semantics<parallel>, #tpu.dimension_semantics<arbitrary>], iteration_bounds = array<i64: 1, 1>, scalar_prefetch = 0 : i64, scratch_operands = 1 : i64, tpu.core_type = #tpu.core_type<tc>, window_params = [{transform_indices = @transform_0, window_bounds = array<i64: 16, 128>}, {transform_indices = @transform_1, window_bounds = array<i64: 128, 256>}, {transform_indices = @transform_2, window_bounds = array<i64: 1, 256>}, {transform_indices = @transform_3, window_bounds = array<i64: 256, 128>}, {pipeline_mode = #tpu.pipeline_mode<synchronous>, transform_indices = @transform_4, window_bounds = array<i64: 1, 128>}, {transform_indices = @transform_5, window_bounds = array<i64: 16, 128>}]} {
    %c0_i32 = arith.constant 0 : i32
    %0 = arith.cmpi eq, %arg1, %c0_i32 : i32
    %1 = arith.extui %0 : i1 to i32
    %c0_i32_0 = arith.constant 0 : i32
    %2 = arith.cmpi ne, %1, %c0_i32_0 : i32
    scf.if %2 {
      %cst_18 = arith.constant 0.000000e+00 : f32
      %25 = vector.broadcast %cst_18 : f32 to vector<16x128xf32>
      %c0_19 = arith.constant 0 : index
      %c0_20 = arith.constant 0 : index
      %26 = vector.load %arg8[%c0_19, %c0_20] : memref<16x128xf32, #tpu.memory_space<vmem>>, vector<16x128xf32>
      tpu.vector_store %arg8[%c0_19, %c0_20], %25 {strides = array<i32>} : memref<16x128xf32, #tpu.memory_space<vmem>>, vector<16x128xf32>,
    } else {
    }
    %c0 = arith.constant 0 : index
    %c0_1 = arith.constant 0 : index
    %3 = vector.load %arg2[%c0, %c0_1] : memref<16x128xf32, #tpu.memory_space<vmem>>, vector<16x128xf32>
    %c0_2 = arith.constant 0 : index
    %c0_3 = arith.constant 0 : index
    %4 = vector.load %arg3[%c0_2, %c0_3] : memref<128x256xf32, #tpu.memory_space<vmem>>, vector<128x256xf32>
    %cst = arith.constant dense<0.000000e+00> : vector<16x256xf32>
    %5 = tpu.matmul %3, %4, %cst {dimension_numbers = #tpu.dot_dimension_numbers<[1], [0], [0], [1], [0, 0, 1, 1], [], []>} : vector<16x128xf32>, vector<128x256xf32>, vector<16x256xf32> -> vector<16x256xf32>
    %c0_4 = arith.constant 0 : index
    %c0_5 = arith.constant 0 : index
    %6 = vector.load %arg4[%c0_4, %c0_5] : memref<1x256xf32, #tpu.memory_space<vmem>>, vector<1x256xf32>
    %7 = vector.broadcast %6 : vector<1x256xf32> to vector<16x256xf32>
    %8 = arith.addf %5, %7 : vector<16x256xf32>
    %cst_6 = arith.constant 5.000000e-01 : f32
    %9 = vector.broadcast %cst_6 : f32 to vector<16x256xf32>
    %10 = arith.mulf %9, %8 : vector<16x256xf32>
    %cst_7 = arith.constant 0.707106769 : f32
    %11 = vector.broadcast %cst_7 : f32 to vector<16x256xf32>
    %12 = arith.mulf %8, %11 : vector<16x256xf32>
    %13 = math.erf %12 : vector<16x256xf32>
    %cst_8 = arith.constant 1.000000e+00 : f32
    %14 = vector.broadcast %cst_8 : f32 to vector<16x256xf32>
    %15 = arith.addf %14, %13 : vector<16x256xf32>
    %16 = arith.mulf %10, %15 : vector<16x256xf32>
    %c0_9 = arith.constant 0 : index
    %c0_10 = arith.constant 0 : index
    %17 = vector.load %arg8[%c0_9, %c0_10] : memref<16x128xf32, #tpu.memory_space<vmem>>, vector<16x128xf32>
    %c0_11 = arith.constant 0 : index
    %c0_12 = arith.constant 0 : index
    %18 = vector.load %arg5[%c0_11, %c0_12] : memref<256x128xf32, #tpu.memory_space<vmem>>, vector<256x128xf32>
    %cst_13 = arith.constant dense<0.000000e+00> : vector<16x128xf32>
    %19 = tpu.matmul %16, %18, %cst_13 {dimension_numbers = #tpu.dot_dimension_numbers<[1], [0], [0], [1], [0, 0, 1, 1], [], []>} : vector<16x256xf32>, vector<256x128xf32>, vector<16x128xf32> -> vector<16x128xf32>
    %20 = arith.addf %17, %19 : vector<16x128xf32>
    %c0_14 = arith.constant 0 : index
    %c0_15 = arith.constant 0 : index
    %21 = vector.load %arg8[%c0_14, %c0_15] : memref<16x128xf32, #tpu.memory_space<vmem>>, vector<16x128xf32>
    tpu.vector_store %arg8[%c0_14, %c0_15], %20 {strides = array<i32>} : memref<16x128xf32, #tpu.memory_space<vmem>>, vector<16x128xf32>,
    %c0_i32_16 = arith.constant 0 : i32
    %22 = arith.cmpi eq, %arg1, %c0_i32_16 : i32
    %23 = arith.extui %22 : i1 to i32
    %c0_i32_17 = arith.constant 0 : i32
    %24 = arith.cmpi ne, %23, %c0_i32_17 : i32
    scf.if %24 {
      %c0_18 = arith.constant 0 : index
      %c0_19 = arith.constant 0 : index
      %25 = vector.load %arg8[%c0_18, %c0_19] : memref<16x128xf32, #tpu.memory_space<vmem>>, vector<16x128xf32>
      %c0_20 = arith.constant 0 : index
      %c0_21 = arith.constant 0 : index
      %26 = vector.load %arg6[%c0_20, %c0_21] : memref<1x128xf32, #tpu.memory_space<vmem>>, vector<1x128xf32>
      %27 = vector.broadcast %26 : vector<1x128xf32> to vector<16x128xf32>
      %28 = arith.addf %25, %27 : vector<16x128xf32>
      %c0_22 = arith.constant 0 : index
      %c0_23 = arith.constant 0 : index
      %29 = vector.load %arg7[%c0_22, %c0_23] : memref<16x128xf32, #tpu.memory_space<vmem>>, vector<16x128xf32>
      tpu.vector_store %arg7[%c0_22, %c0_23], %28 {strides = array<i32>} : memref<16x128xf32, #tpu.memory_space<vmem>>, vector<16x128xf32>,
    } else {
    }
    return
  }
  func.func @transform_0(%arg0: i32, %arg1: i32) -> (i32, i32) {
    %c0_i32 = arith.constant 0 : i32
    %c0_i32_0 = arith.constant 0 : i32
    return %arg0, %c0_i32 : i32, i32
  }
  func.func @transform_1(%arg0: i32, %arg1: i32) -> (i32, i32) {
    %c0_i32 = arith.constant 0 : i32
    %c0_i32_0 = arith.constant 0 : i32
    return %c0_i32, %arg1 : i32, i32
  }
  func.func @transform_2(%arg0: i32, %arg1: i32) -> (i32, i32) {
    %c0_i32 = arith.constant 0 : i32
    %c0_i32_0 = arith.constant 0 : i32
    return %c0_i32, %arg1 : i32, i32
  }
  func.func @transform_3(%arg0: i32, %arg1: i32) -> (i32, i32) {
    %c0_i32 = arith.constant 0 : i32
    %c0_i32_0 = arith.constant 0 : i32
    return %arg1, %c0_i32 : i32, i32
  }
  func.func @transform_4(%arg0: i32, %arg1: i32) -> (i32, i32) {
    %c0_i32 = arith.constant 0 : i32
    %c0_i32_0 = arith.constant 0 : i32
    %c0_i32_1 = arith.constant 0 : i32
    return %c0_i32, %c0_i32_0 : i32, i32
  }
  func.func @transform_5(%arg0: i32, %arg1: i32) -> (i32, i32) {
    %c0_i32 = arith.constant 0 : i32
    %c0_i32_0 = arith.constant 0 : i32
    return %arg0, %c0_i32 : i32, i32
  }
}

</mosaic_0001>

<bundles_post_ra>
// kernel: feed_forward.1
= control target key start
LH: loop header
LB: loop body
LE: loop exit
PB: predicated region body
PF: predicated region fallthrough
CT: control target
= control target key end

     0   :  { %10 = vsyncpa [#allocation4], 0  ;;  %s676_s0 = inlined_call_operand.hbm [shape: f32[16,128], index: 0, kind: input, shape index: {}]   ;;  %s677_s1 = inlined_call_operand.hbm [shape: f32[128,256], index: 1, kind: input, shape index: {}]   ;;  %s678_s2 = inlined_call_operand.vmem [shape: f32[1,256], index: 2, kind: input, shape index: {}]   ;;  %s679_s3 = inlined_call_operand.hbm [shape: f32[256,128], index: 3, kind: input, shape index: {}]   ;;  %s680_s4 = inlined_call_operand.vmem [shape: f32[1,128], index: 4, kind: input, shape index: {}]   ;;  %s681_s5 = inlined_call_operand.hbm [shape: f32[16,128], index: 5, kind: output, shape index: {}]  }
   0x1   :  { %11 = vsyncpa [#allocation7], 0 }
   0x2   :  { %12 = vsyncpa [#allocation5], 0  ;;  %s572_s18 = smov [#allocation6]   ;;  %s478_s22 = scalar_lea.hbm %s677_s1, 4096 }
   0x3   :  { %s30_s19 = sshll.u32 %s572_s18, 4  ;;  %p479_p0 = scmp.ne.s32.totalorder %s677_s1, %s478_s22  ;;  %s31_s19 = int_to_ptr.vmem [resolvable:$true] %s30_s19 }
   0x4   :  { %p482_p1 = scmp.lt.u32.totalorder %s478_s22, %s677_s1 }
   0x6   :  { %p484_p2 = pnand %p482_p1, %p479_p0 }
   0x8   :  { %487 = shalt.err (!%p484_p2)
}
   0x9   :  { %s488_s27 = scalar_lea.vmem %s31_s19, 4096  ;;  %p493_p4 = scmp.lt.s32.totalorder %s31_s19, %s31_s19 }
   0xa   :  { %p489_p3 = scmp.ne.s32.totalorder %s31_s19, %s488_s27  ;;  %p494_p5 = scmp.lt.s32.totalorder %s488_s27, %s488_s27 }
   0xc   :  { %p495_p6 = por %p494_p5, %p493_p4 }
   0xe   :  { %p496_p7 = pnand %p495_p6, %p489_p3 }
  0x10   :  { %499 = shalt.err (!%p496_p7)
}
  0x11   :  { %s573_s28 = smov 256   ;;  %s574_s29 = smov 16  }
  0x12   :  { %36 = dma.hbm_to_vmem [thread:$0]  %s677_s1, 4096, %s31_s19, [#allocation7], %s573_s28, %s573_s28, %s574_s29  }
  0x13   :  { %s575_s7 = smov [#allocation3]   ;;  %s500_s11 = scalar_lea.hbm %s676_s0, 256 }
  0x14   :  { %s18_s8 = sshll.u32 %s575_s7, 4  ;;  %p501_p8 = scmp.ne.s32.totalorder %s676_s0, %s500_s11  ;;  %s19_s8 = int_to_ptr.vmem [resolvable:$true] %s18_s8 }
  0x15   :  { %p504_p9 = scmp.lt.u32.totalorder %s500_s11, %s676_s0 }
  0x17   :  { %p506_p10 = pnand %p504_p9, %p501_p8 }
  0x19   :  { %509 = shalt.err (!%p506_p10)
}
  0x1a   :  { %s510_s16 = scalar_lea.vmem %s19_s8, 256  ;;  %p515_p12 = scmp.lt.s32.totalorder %s19_s8, %s19_s8 }
  0x1b   :  { %p511_p11 = scmp.ne.s32.totalorder %s19_s8, %s510_s16  ;;  %p516_p13 = scmp.lt.s32.totalorder %s510_s16, %s510_s16 }
  0x1d   :  { %p517_p0 = por %p516_p13, %p515_p12 }
  0x1f   :  { %p518_p1 = pnand %p517_p0, %p511_p11 }
  0x21   :  { %521 = shalt.err (!%p518_p1)
}
  0x22   :  { %s576_s1 = smov 128   ;;  %s577_s17 = smov 8  }
  0x23   :  { %24 = dma.hbm_to_vmem [thread:$0]  %s676_s0, 256, %s19_s8, [#allocation4], %s576_s1, %s576_s1, %s577_s17  }
  0x24   :  { %s578_s20 = smov [#allocation8]   ;;  %s522_s24 = scalar_lea.hbm %s679_s3, 4096 }
  0x25   :  { %s44_s21 = sshll.u32 %s578_s20, 4  ;;  %p523_p2 = scmp.ne.s32.totalorder %s679_s3, %s522_s24  ;;  %s45_s21 = int_to_ptr.vmem [resolvable:$true] %s44_s21 }
  0x26   :  { %p526_p3 = scmp.lt.u32.totalorder %s522_s24, %s679_s3 }
  0x28   :  { %p528_p4 = pnand %p526_p3, %p523_p2 }
  0x2a   :  { %531 = shalt.err (!%p528_p4)
}
  0x2b   :  { %s532_s29 = scalar_lea.vmem %s45_s21, 4096  ;;  %p537_p6 = scmp.lt.s32.totalorder %s45_s21, %s45_s21 }
  0x2c   :  { %p533_p5 = scmp.ne.s32.totalorder %s45_s21, %s532_s29  ;;  %p538_p7 = scmp.lt.s32.totalorder %s532_s29, %s532_s29 }
  0x2e   :  { %p539_p8 = por %p538_p7, %p537_p6 }
  0x30   :  { %p540_p9 = pnand %p539_p8, %p533_p5 }
  0x32   :  { %543 = shalt.err (!%p540_p9)
}
  0x33   :  { %50 = dma.hbm_to_vmem [thread:$0]  %s679_s3, 4096, %s45_s21, [#allocation7], %s576_s1, %s576_s1, %s577_s17  }
  0x34   :  { %566 = dma.done.wait [#allocation4], 256  }
  0x35   :  { %567 = vsyncadd [#allocation4], 4294967040 }
  0x36   :  { %568 = dma.done.wait [#allocation7], 8192  }
  0x37   :  { %569 = vsyncadd [#allocation7], 4294959104  ;;  %v579_v0 = vmov 0.0   ;;  %v71_v1 = vld [vmem:[#allocation6 + $0x8] sm:$0xff]  ;;  %v73_v2 = vld [vmem:[#allocation6 + $0x18] sm:$0xff]  ;;  %s580_s8 = smov [#allocation9]  }
  0x38   :  { %178 = vmatprep.mubr.f32.mxu0 %v579_v0  ;;  %v70_v3 = vld [vmem:[#allocation6] sm:$0xff]  ;;  %v397_v4 = vpack.c.bf16 %v73_v2, %v71_v1  ;;  %v72_v5 = vld [vmem:[#allocation6 + $0x10] sm:$0xff]  ;;  %v75_v6 = vld [vmem:[#allocation6 + $0x28] sm:$0xff]  ;;  %s345_s9 = sshll.u32 %s580_s8, 4  ;;  %s346_s9 = int_to_ptr.vmem [resolvable:$true] %s345_s9 }
  0x39   :  { %v77_v7 = vld [vmem:[#allocation6 + $0x38] sm:$0xff]  ;;  %v399_v8 = vpack.c.bf16 %v72_v5, %v70_v3  ;;  %v74_v10 = vld [vmem:[#allocation6 + $0x20] sm:$0xff]  ;;  %v76_v11 = vld [vmem:[#allocation6 + $0x30] sm:$0xff]  ;;  %s544_s10 = scalar_lea.vmem %s346_s9, 256  ;;  %p549_p11 = scmp.lt.s32.totalorder %s346_s9, %s346_s9 }
  0x3a   :  { %v401_v9 = vpack.c.bf16 %v77_v7, %v75_v6  ;;  %v79_v12 = vld [vmem:[#allocation6 + $0x48] sm:$0xff]  ;;  %398 = vmatprep.subr.bf16.mxu0 %v397_v4  ;;  %v81_v13 = vld [vmem:[#allocation6 + $0x58] sm:$0xff]  ;;  %v403_v14 = vpack.c.bf16 %v76_v11, %v74_v10  ;;  %v78_v16 = vld [vmem:[#allocation6 + $0x40] sm:$0xff]  ;;  %p545_p10 = scmp.ne.s32.totalorder %s346_s9, %s544_s10  ;;  %p550_p12 = scmp.lt.s32.totalorder %s544_s10, %s544_s10 }
  0x3b   :  { %400 = vmatpush1.bf16.msra.mxu0 %v399_v8  ;;  %v405_v15 = vpack.c.bf16 %v81_v13, %v79_v12  ;;  %v80_v17 = vld [vmem:[#allocation6 + $0x50] sm:$0xff]  ;;  %v83_v18 = vld [vmem:[#allocation6 + $0x68] sm:$0xff]  ;;  %v85_v19 = vld [vmem:[#allocation6 + $0x78] sm:$0xff] }
  0x3c   :  { %402 = vmatprep.subr.bf16.mxu0 %v401_v9  ;;  %v407_v20 = vpack.c.bf16 %v80_v17, %v78_v16  ;;  %v409_v21 = vpack.c.bf16 %v85_v19, %v83_v18  ;;  %v82_v22 = vld [vmem:[#allocation6 + $0x60] sm:$0xff]  ;;  %v84_v23 = vld [vmem:[#allocation6 + $0x70] sm:$0xff]  ;;  %v87_v24 = vld [vmem:[#allocation6 + $0x88] sm:$0xff]  ;;  %p551_p13 = por %p550_p12, %p549_p11 }
  0x3d   :  { %v89_v25 = vld [vmem:[#allocation6 + $0x98] sm:$0xff]  ;;  %v86_v26 = vld [vmem:[#allocation6 + $0x80] sm:$0xff]  ;;  %v88_v27 = vld [vmem:[#allocation6 + $0x90] sm:$0xff]  ;;  %v411_v30 = vpack.c.bf16 %v84_v23, %v82_v22 }
  0x3e   :  { %v229_v28 = vld [vmem:[#allocation8 + $0x80] sm:$0xff]  ;;  %v230_v29 = vld [vmem:[#allocation8 + $0x88] sm:$0xff]  ;;  %v231_v35 = vld [vmem:[#allocation8 + $0x90] sm:$0xff]  ;;  %v413_v36 = vpack.c.bf16 %v89_v25, %v87_v24  ;;  %v415_v46 = vpack.c.bf16 %v88_v27, %v86_v26  ;;  %p552_p0 = pnand %p551_p13, %p545_p10 }
  0x3f   :  { %404 = vmatpush1.bf16.msra.mxu0 %v403_v14  ;;  %v91_v31 = vld [vmem:[#allocation6 + $0xa8] sm:$0xff]  ;;  %v429_v32 = vpack.c.bf16 %v230_v29, %v229_v28  ;;  %v213_v33 = vld [vmem:[#allocation8] sm:$0xff]  ;;  %v232_v38 = vld [vmem:[#allocation8 + $0x98] sm:$0xff] }
  0x40   :  { %406 = vmatprep.subr.bf16.mxu0 %v405_v15  ;;  %v214_v34 = vld [vmem:[#allocation8 + $0x8] sm:$0xff]  ;;  %v215_v39 = vld [vmem:[#allocation8 + $0x10] sm:$0xff]  ;;  %v216_v40 = vld [vmem:[#allocation8 + $0x18] sm:$0xff]  ;;  %v433_v42 = vpack.c.bf16 %v232_v38, %v231_v35  ;;  %v104_v35 = vlaneseq }
  0x41   :  { %v431_v37 = vpack.c.bf16 %v214_v34, %v213_v33  ;;  %v93_v41 = vld [vmem:[#allocation6 + $0xb8] sm:$0xff]  ;;  %430 = vmatprep.subr.bf16.mxu1 %v429_v32  ;;  %v233_v43 = vld [vmem:[#allocation8 + $0xa0] sm:$0xff]  ;;  %v234_v44 = vld [vmem:[#allocation8 + $0xa8] sm:$0xff]  ;;  %v435_v45 = vpack.c.bf16 %v216_v40, %v215_v39 }
  0x42   :  { %v437_v47 = vpack.c.bf16 %v234_v44, %v233_v43  ;;  %v217_v48 = vld [vmem:[#allocation8 + $0x20] sm:$0xff]  ;;  %v218_v49 = vld [vmem:[#allocation8 + $0x28] sm:$0xff]  ;;  %v417_v50 = vpack.c.bf16 %v93_v41, %v91_v31  ;;  %v92_v52 = vld [vmem:[#allocation6 + $0xb0] sm:$0xff] }
  0x43   :  { %408 = vmatpush1.bf16.msra.mxu0 %v407_v20  ;;  %432 = vmatpush3.bf16.msra.mxu1 %v431_v37  ;;  %v90_v51 = vld [vmem:[#allocation6 + $0xa0] sm:$0xff]  ;;  %v95_v53 = vld [vmem:[#allocation6 + $0xc8] sm:$0xff]  ;;  %v97_v54 = vld [vmem:[#allocation6 + $0xd8] sm:$0xff]  ;;  %v439_v55 = vpack.c.bf16 %v218_v49, %v217_v48 }
  0x44   :  { %410 = vmatprep.subr.bf16.mxu0 %v409_v21  ;;  %434 = vmatprep.subr.bf16.mxu1 %v433_v42  ;;  %v419_v56 = vpack.c.bf16 %v92_v52, %v90_v51  ;;  %v421_v57 = vpack.c.bf16 %v97_v54, %v95_v53  ;;  %v94_v58 = vld [vmem:[#allocation6 + $0xc0] sm:$0xff]  ;;  %v96_v59 = vld [vmem:[#allocation6 + $0xd0] sm:$0xff]  ;;  %v99_v60 = vld [vmem:[#allocation6 + $0xe8] sm:$0xff] }
  0x45   :  { %v101_v61 = vld [vmem:[#allocation6 + $0xf8] sm:$0xff]  ;;  %v423_v62 = vpack.c.bf16 %v96_v59, %v94_v58  ;;  %v98_v1 = vld [vmem:[#allocation6 + $0xe0] sm:$0xff]  ;;  %v100_v2 = vld [vmem:[#allocation6 + $0xf0] sm:$0xff] }
  0x46   :  { %v425_v63 = vpack.c.bf16 %v101_v61, %v99_v60  ;;  %v427_v3 = vpack.c.bf16 %v100_v2, %v98_v1  ;;  %v68_v4 = vld [vmem:[#allocation3] sm:$0xff]  ;;  %v69_v5 = vld [vmem:[#allocation3 + $0x8] sm:$0xff]  ;;  %v237_v12 = vld [vmem:[#allocation8 + $0xc0] sm:$0xff] }
  0x47   :  { %412 = vmatpush1.bf16.msra.mxu0 %v411_v30  ;;  %436 = vmatpush3.bf16.msra.mxu1 %v435_v45  ;;  %v235_v6 = vld [vmem:[#allocation8 + $0xb0] sm:$0xff]  ;;  %v236_v7 = vld [vmem:[#allocation8 + $0xb8] sm:$0xff]  ;;  %v238_v13 = vld [vmem:[#allocation8 + $0xc8] sm:$0xff] }
  0x48   :  { %414 = vmatprep.subr.bf16.mxu0 %v413_v36  ;;  %438 = vmatprep.subr.bf16.mxu1 %v437_v47  ;;  %v441_v8 = vpack.c.bf16 %v236_v7, %v235_v6  ;;  %v219_v9 = vld [vmem:[#allocation8 + $0x30] sm:$0xff]  ;;  %v220_v10 = vld [vmem:[#allocation8 + $0x38] sm:$0xff]  ;;  %v445_v14 = vpack.c.bf16 %v238_v13, %v237_v12  ;;  %v221_v15 = vld [vmem:[#allocation8 + $0x40] sm:$0xff]  ;;  %v105_v36 = vshrl.u32 %v104_v35, 7 }
  0x49   :  { %v443_v11 = vpack.c.bf16 %v220_v10, %v219_v9  ;;  %v222_v16 = vld [vmem:[#allocation8 + $0x48] sm:$0xff]  ;;  %v239_v18 = vld [vmem:[#allocation8 + $0xd0] sm:$0xff]  ;;  %v224_v21 = vld [vmem:[#allocation8 + $0x58] sm:$0xff] }
  0x4a   :  { %v447_v17 = vpack.c.bf16 %v222_v16, %v221_v15  ;;  %v223_v20 = vld [vmem:[#allocation8 + $0x50] sm:$0xff]  ;;  %v241_v23 = vld [vmem:[#allocation8 + $0xe0] sm:$0xff]  ;;  %v242_v24 = vld [vmem:[#allocation8 + $0xe8] sm:$0xff]  ;;  %v106_v37 = vsub.s32 0, %v105_v36  ;;  %v110_v39 = vsub.s32 1, %v105_v36 }
  0x4b   :  { %416 = vmatpush1.bf16.msra.mxu0 %v415_v46  ;;  %440 = vmatpush3.bf16.msra.mxu1 %v439_v55  ;;  %v451_v22 = vpack.c.bf16 %v224_v21, %v223_v20  ;;  %v453_v25 = vpack.c.bf16 %v242_v24, %v241_v23  ;;  %v225_v26 = vld [vmem:[#allocation8 + $0x60] sm:$0xff]  ;;  %v226_v27 = vld [vmem:[#allocation8 + $0x68] sm:$0xff]  ;;  %v243_v29 = vld [vmem:[#allocation8 + $0xf0] sm:$0xff] }
  0x4c   :  { %418 = vmatprep.subr.bf16.mxu0 %v417_v50  ;;  %442 = vmatprep.subr.bf16.mxu1 %v441_v8  ;;  %v455_v28 = vpack.c.bf16 %v226_v27, %v225_v26  ;;  %v244_v30 = vld [vmem:[#allocation8 + $0xf8] sm:$0xff]  ;;  %v227_v32 = vld [vmem:[#allocation8 + $0x70] sm:$0xff] }
  0x4d   :  { %v457_v31 = vpack.c.bf16 %v244_v30, %v243_v29  ;;  %v228_v33 = vld [vmem:[#allocation8 + $0x78] sm:$0xff]  ;;  %v102_v38 = vld [vmem:[%s678_s2] sm:$0x3] }
  0x4e   :  { %v459_v34 = vpack.c.bf16 %v228_v33, %v227_v32  ;;  %v107_v40 = vrot.slane %v102_v38, %v106_v37  ;;  %v111_v41 = vrot.slane %v102_v38, %v110_v39  ;;  %v358_v9 = vld [vmem:[%s680_s4] ss:$0 sm:$0xff] }
  0x4f   :  { %420 = vmatpush1.bf16.msra.mxu0 %v419_v56  ;;  %444 = vmatpush3.bf16.msra.mxu1 %v443_v11 }
  0x50   :  { %422 = vmatprep.subr.bf16.mxu0 %v421_v57  ;;  %446 = vmatprep.subr.bf16.mxu1 %v445_v14 }
  0x53   :  { %424 = vmatpush1.bf16.msra.mxu0 %v423_v62  ;;  %448 = vmatpush3.bf16.msra.mxu1 %v447_v17 }
  0x54   :  { %426 = vmatprep.subr.bf16.mxu0 %v425_v63 }
  0x57   :  { %428 = vmatpush1.bf16.msra.mxu0 %v427_v3 }
  0x5a   :  { %179 = vmatmul.mubr.f32.vlgmr.msra.gmra.mrb[0].mxu0 %v68_v4 }
  0x5b   :  { %184 = vmatprep.mubr.f32.mxu0 %v579_v0  ;;  %v240_v0 = vld [vmem:[#allocation8 + $0xd8] sm:$0xff] }
  0x5c   :  { %v449_v19 = vpack.c.bf16 %v240_v0, %v239_v18 }
  0x5e   :  { %185 = vmatmul.mubr.f32.gmra.mrb[2].mxu0 %v69_v5  ;;  %450 = vmatprep.subr.bf16.mxu1 %v449_v19 }
  0x5f   :  { %452 = vmatpush3.bf16.msra.mxu1 %v451_v22 }
  0x60   :  { %454 = vmatprep.subr.bf16.mxu1 %v453_v25 }
  0x63   :  { %456 = vmatpush3.bf16.msra.mxu1 %v455_v28 }
  0x64   :  { %458 = vmatprep.subr.bf16.mxu1 %v457_v31 }
  0x67   :  { %460 = vmatpush3.bf16.msra.mxu1 %v459_v34 }
 0x12d   :  { %v180_v42 = vpop.f32.mrb[0].mxu0 }
 0x12e   :  { %v181_v43 = vadd.f32 %v180_v42, %v107_v40  ;;  %v182_v44 = vpop.f32.mrb[1].mxu0 }
 0x12f   :  { %v183_v45 = vadd.f32 %v182_v44, %v111_v41 }
 0x130   :  { %v195_v46 = vmul.f32 0.70710677, %v181_v43  ;;  %v191_v59 = vmul.f32 0.5, %v181_v43 }
 0x131   :  { %v196_v47 = vmul.f32 0.70710677, %v183_v45  ;;  %v186_v48 = vpop.f32.mrb[2].mxu0  ;;  %v192_v57 = vmul.f32 0.5, %v183_v45 }
 0x132   :  { %470 = verf.f32 %v195_v46  ;;  %v187_v49 = vadd.f32 %v186_v48, %v107_v40  ;;  %v188_v50 = vpop.f32.mrb[3].mxu0 }
 0x133   :  { %472 = verf.f32 %v196_v47  ;;  %v189_v51 = vadd.f32 %v188_v50, %v111_v41 }
 0x134   :  { %v197_v52 = vmul.f32 0.70710677, %v187_v49  ;;  %v193_v4 = vmul.f32 0.5, %v187_v49 }
 0x135   :  { %v198_v53 = vmul.f32 0.70710677, %v189_v51  ;;  %v194_v2 = vmul.f32 0.5, %v189_v51 }
 0x136   :  { %474 = verf.f32 %v197_v52 }
 0x137   :  { %476 = verf.f32 %v198_v53 }
 0x13c   :  { %v471_v54 = vpop.eup %470 }
 0x13d   :  { %v473_v55 = vpop.eup %472  ;;  %v203_v56 = vadd.f32 1.0, %v471_v54 }
 0x13e   :  { %v204_v58 = vadd.f32 1.0, %v473_v55 }
 0x13f   :  { %v207_v1 = vmul.f32 %v203_v56, %v191_v59 }
 0x140   :  { %v475_v60 = vpop.eup %474  ;;  %v208_v61 = vmul.f32 %v204_v58, %v192_v57 }
 0x141   :  { %v477_v62 = vpop.eup %476  ;;  %v205_v63 = vadd.f32 1.0, %v475_v60 }
 0x142   :  { %v206_v3 = vadd.f32 1.0, %v477_v62  ;;  %309 = vmatprep.mubr.f32.mxu1 %v208_v61 }
 0x143   :  { %310 = vmatmul.mubr.f32.vlgmr.msra.gmra.mrb[0].mxu1 %v207_v1  ;;  %v209_v6 = vmul.f32 %v205_v63, %v193_v4 }
 0x144   :  { %v210_v5 = vmul.f32 %v206_v3, %v194_v2 }
 0x146   :  { %314 = vmatprep.mubr.f32.mxu1 %v210_v5 }
 0x147   :  { %315 = vmatmul.mubr.f32.gmra.mrb[2].mxu1 %v209_v6 }
 0x216   :  { %v391_v7 = vpop.f32.mrb[0].mxu1 }
 0x217   :  { %v392_v8 = vpop.f32.mrb[1].mxu1 }
 0x218   :  { %v393_v10 = vadd.f32 %v392_v8, %v391_v7 }
 0x21a   :  { %v336_v11 = vadd.f32 %v393_v10, %v358_v9  ;;  %v394_v12 = vpop.f32.mrb[2].mxu1 }
 0x21b   :  { %v395_v13 = vpop.f32.mrb[3].mxu1 }
 0x21c   :  { %338 = vst [vmem:[#allocation9] sm:$0xff] %v336_v11  ;;  %v396_v14 = vadd.f32 %v395_v13, %v394_v12 }
 0x21e   :  { %v337_v15 = vadd.f32 %v396_v14, %v358_v9 }
 0x220   :  { %339 = vst [vmem:[#allocation9 + $0x8] sm:$0xff] %v337_v15 }
 0x221   :  { %555 = shalt.err (!%p552_p0)
}
 0x222   :  { %s556_s12 = scalar_lea.hbm %s681_s5, 256 }
 0x223   :  { %p557_p1 = scmp.ne.s32.totalorder %s681_s5, %s556_s12  ;;  %p560_p2 = scmp.lt.u32.totalorder %s556_s12, %s681_s5 }
 0x225   :  { %p562_p3 = pnand %p560_p2, %p557_p1 }
 0x227   :  { %565 = shalt.err (!%p562_p3)
}
 0x228   :  { %351 = dma.vmem_to_hbm [thread:$0]  %s346_s9, 256, %s681_s5, [#allocation5], %s576_s1, %s576_s1, %s577_s17  }
 0x229   :  { %570 = dma.done.wait [#allocation5], 256  }
 0x22a   :  { %571 = vsyncadd [#allocation5], 4294967040 }
 0x22b   :  { %355 = vsyncpa [#allocation4], 1 }
 0x22c   :  { %356 = vsyncpa [#allocation7], 1 }
 0x22d   :  { %357 = vsyncpa [#allocation5], 1 }

</bundles_post_ra>
